<compile_context>
chip_gen: v5e
topology: v5e:2x2
jax: 0.10.0
libtpu: 0.0.40
codegen_flags: <defaults>
</compile_context>

<pallas_src>
import math

import jax
import jax.numpy as jnp
from jax.experimental import pallas as pl
from jax.experimental.pallas import tpu as pltpu


# --------------------------------- kernels ------------------------------------
def _drop_path_kernel(x_ref, s_ref, o_ref):
    # x_ref: (Bt, Ft); s_ref: (Bt, 1), both in x.dtype -> single VPU broadcast
    # multiply in the input dtype (no full-tile f32 round trip).
    o_ref[...] = x_ref[...] * s_ref[...]


def _drop_path_add_kernel(x_ref, r_ref, s_ref, o_ref):
    # Fused residual consumer: out = residual + x * scale.
    o_ref[...] = r_ref[...] + x_ref[...] * s_ref[...]


# ------------------------------ tiling helper ----------------------------------
def _pick_tiles(B, F, itemsize, target_bytes=2 << 20):
    """Pick (Bt, Ft) so each block is ~target_bytes, lane-dense, and legal.

    Block-shape rules: last dim must be a multiple of 128 or the full dim;
    second-to-last must be a multiple of 8 or the full dim. Ragged tails are
    handled by pl.cdiv grids, so no exact-divisibility requirement.
    """
    # Feature tile (lanes): big 128-multiple, or full extent when F is small.
    ft_cap = max(128, (target_bytes // (8 * itemsize) // 128) * 128)
    Ft = F if F <= ft_cap else ft_cap

    # Batch tile (sublanes): multiple of 8 (or full B), grown to the byte target.
    if B <= 8:
        Bt = B
    else:
        want = max(8, target_bytes // max(Ft * itemsize, 1))
        Bt = min(((want + 7) // 8) * 8, ((B + 7) // 8) * 8, 512)
        if Bt >= B:
            Bt = B  # full extent is always legal

    # Guarantee >= 2 grid blocks when possible so both v7x TCs get work.
    if pl.cdiv(B, Bt) * pl.cdiv(F, Ft) < 2:
        if B > 8:
            Bt = 8
        elif F >= 256:
            Ft = ((F // 2 + 127) // 128) * 128
    return Bt, Ft


# --------------------------------- wrapper -------------------------------------
def drop_path_pallas(x, drop_prob, training, scale_by_keep, key, residual=None):
    """Pallas TPU DropPath matching the torch module's forward pass.

    If `residual` is given, returns residual + drop_path(x) (fused add).
    """
    if drop_prob == 0.0 or not training:
        return x if residual is None else x + residual  # identity path

    keep_prob = 1.0 - drop_prob
    B = x.shape[0]
    # One Bernoulli draw per sample, computed in x.dtype like torch; pre-fold
    # the 1/keep_prob rescale so the kernel is a single broadcast multiply.
    mask = jax.random.bernoulli(key, keep_prob, (B,)).astype(x.dtype)
    scale = mask / jnp.asarray(keep_prob, x.dtype) if scale_by_keep else mask

    F = math.prod(x.shape[1:]) if x.ndim > 1 else 1
    x2 = x.reshape(B, F)
    scale2 = scale.reshape(B, 1)

    itemsize = x.dtype.itemsize
    Bt, Ft = _pick_tiles(B, F, itemsize)
    grid = (pl.cdiv(B, Bt), pl.cdiv(F, Ft))

    # VMEM budget: double-buffered input + output blocks (+ residual if fused)
    # plus slack; keep it well under v7x's 64 MiB physical VMEM.
    n_big = 2 if residual is None else 3
    block_bytes = Bt * Ft * itemsize
    vmem_limit = int(min(max(2 * n_big * block_bytes + (2 << 20), 16 << 20),
                         48 << 20))

    x_spec = pl.BlockSpec((Bt, Ft), lambda i, j: (i, j))
    s_spec = pl.BlockSpec((Bt, 1), lambda i, j: (i, 0))  # resident across j

    if residual is None:
        kernel = _drop_path_kernel
        in_specs = [x_spec, s_spec]
        operands = (x2, scale2)
    else:
        kernel = _drop_path_add_kernel
        r_spec = pl.BlockSpec((Bt, Ft), lambda i, j: (i, j))
        in_specs = [x_spec, r_spec, s_spec]
        operands = (x2, residual.reshape(B, F), scale2)

    out = pl.pallas_call(
        kernel,
        out_shape=jax.ShapeDtypeStruct((B, F), x.dtype),
        grid=grid,
        in_specs=in_specs,
        out_specs=pl.BlockSpec((Bt, Ft), lambda i, j: (i, j)),
        compiler_params=pltpu.CompilerParams(
            dimension_semantics=("parallel", "parallel"),
            vmem_limit_bytes=vmem_limit),
    )(*operands)
    return out.reshape(x.shape)


# ----------------------------- pure-JAX reference -------------------------------
def drop_path_ref(x, drop_prob, training, scale_by_keep, key, residual=None):
    if drop_prob == 0.0 or not training:
        y = x
    else:
        keep_prob = 1.0 - drop_prob
        B = x.shape[0]
        mask = jax.random.bernoulli(key, keep_prob, (B,)).astype(x.dtype)
        if scale_by_keep:
            mask = mask / jnp.asarray(keep_prob, x.dtype)
        y = x * mask.reshape((B,) + (1,) * (x.ndim - 1))
    return y if residual is None else y + residual


# ---------------------------------- main ----------------------------------------
if __name__ == "__main__":
    B, N, C = 16, 8, 32          # (batch, seq, channels) residual-path shape
    drop_prob = 0.25

    key = jax.random.PRNGKey(0)
    kx, kr, kmask = jax.random.split(key, 3)
    x = jax.random.normal(kx, (B, N, C), dtype=jnp.float32)
    res = jax.random.normal(kr, (B, N, C), dtype=jnp.float32)

    # training mode, scale_by_keep=True (default DropPath configuration)
    out = jax.block_until_ready(drop_path_pallas(x, drop_prob, True, True, kmask))
    ref = drop_path_ref(x, drop_prob, True, True, kmask)
    assert jnp.allclose(out, ref, atol=1e-6, rtol=1e-6), \
        float(jnp.max(jnp.abs(out - ref)))

    # training mode, scale_by_keep=False
    out2 = jax.block_until_ready(drop_path_pallas(x, drop_prob, True, False, kmask))
    ref2 = drop_path_ref(x, drop_prob, True, False, kmask)
    assert jnp.allclose(out2, ref2, atol=1e-6, rtol=1e-6)

    # fused residual add variant
    out3 = jax.block_until_ready(
        drop_path_pallas(x, drop_prob, True, True, kmask, residual=res))
    ref3 = drop_path_ref(x, drop_prob, True, True, kmask, residual=res)
    assert jnp.allclose(out3, ref3, atol=1e-6, rtol=1e-6)

    # bf16: same-dtype multiply -> bit-exact vs reference
    xb = x.astype(jnp.bfloat16)
    outb = jax.block_until_ready(drop_path_pallas(xb, drop_prob, True, True, kmask))
    refb = drop_path_ref(xb, drop_prob, True, True, kmask)
    assert jnp.array_equal(outb, refb)

    # eval mode / drop_prob == 0: exact identity
    assert jnp.array_equal(drop_path_pallas(x, drop_prob, False, True, kmask), x)
    assert jnp.array_equal(drop_path_pallas(x, 0.0, True, True, kmask), x)

    print("KERNEL_OK")
</pallas_src>

<mosaic_0001>
module attributes {stable_mosaic.version = 11 : i64} {
  func.func @_drop_path_kernel(%arg0: i32, %arg1: i32, %arg2: memref<8x256xf32, #tpu.memory_space<vmem>>, %arg3: memref<8x1xf32, #tpu.memory_space<vmem>>, %arg4: memref<8x256xf32, #tpu.memory_space<vmem>>) attributes {dimension_semantics = [#tpu.dimension_semantics<parallel>, #tpu.dimension_semantics<parallel>], iteration_bounds = array<i64: 2, 1>, scalar_prefetch = 0 : i64, scratch_operands = 0 : i64, tpu.core_type = #tpu.core_type<tc>, window_params = [{transform_indices = @transform_0, window_bounds = array<i64: 8, 256>}, {transform_indices = @transform_1, window_bounds = array<i64: 8, 1>}, {transform_indices = @transform_2, window_bounds = array<i64: 8, 256>}]} {
    %c0 = arith.constant 0 : index
    %c0_0 = arith.constant 0 : index
    %0 = vector.load %arg2[%c0, %c0_0] : memref<8x256xf32, #tpu.memory_space<vmem>>, vector<8x256xf32>
    %c0_1 = arith.constant 0 : index
    %c0_2 = arith.constant 0 : index
    %1 = vector.load %arg3[%c0_1, %c0_2] : memref<8x1xf32, #tpu.memory_space<vmem>>, vector<8x1xf32>
    %2 = vector.broadcast %1 : vector<8x1xf32> to vector<8x256xf32>
    %3 = arith.mulf %0, %2 : vector<8x256xf32>
    %c0_3 = arith.constant 0 : index
    %c0_4 = arith.constant 0 : index
    %4 = vector.load %arg4[%c0_3, %c0_4] : memref<8x256xf32, #tpu.memory_space<vmem>>, vector<8x256xf32>
    tpu.vector_store %arg4[%c0_3, %c0_4], %3 {strides = array<i32>} : memref<8x256xf32, #tpu.memory_space<vmem>>, vector<8x256xf32>,
    return
  }
  func.func @transform_0(%arg0: i32, %arg1: i32) -> (i32, i32) {
    %c0_i32 = arith.constant 0 : i32
    return %arg0, %arg1 : i32, i32
  }
  func.func @transform_1(%arg0: i32, %arg1: i32) -> (i32, i32) {
    %c0_i32 = arith.constant 0 : i32
    %c0_i32_0 = arith.constant 0 : i32
    return %arg0, %c0_i32 : i32, i32
  }
  func.func @transform_2(%arg0: i32, %arg1: i32) -> (i32, i32) {
    %c0_i32 = arith.constant 0 : i32
    return %arg0, %arg1 : i32, i32
  }
}

</mosaic_0001>

<bundles_post_ra>
// kernel: tpu_custom_call.1
= control target key start
LH: loop header
LB: loop body
LE: loop exit
PB: predicated region body
PF: predicated region fallthrough
CT: control target
= control target key end

     0   :  { %7 = vsyncpa [#allocation3], 0  ;;  %s663_s0 = inlined_call_operand.hbm [shape: f32[16,256], index: 0, kind: input, shape index: {}]   ;;  %s664_s1 = inlined_call_operand.vmem [shape: f32[16,1], index: 1, kind: input, shape index: {}]   ;;  %s665_s2 = inlined_call_operand.hbm [shape: f32[16,256], index: 2, kind: output, shape index: {}]  }
   0x1   :  { %9 = vsyncpa [#allocation3 + $0x1], 0 }
   0x2   :  { %10 = vsyncpa [#allocation4], 0 }
   0x3   :  { %12 = vsyncpa [#allocation4 + $0x1], 0  ;;  %s538_s9 = smov 0   ;;  %s540_s10 = smov 0  }
   0x4   :  { %s542_s11 = smov 0   ;;  %s544_s12 = smov 0  }
   0x5   :  { %s546_s13 = smov 0   ;;  %s548_s14 = smov 0  }
   0x6 LB: > { %s326_s15 = sadd.s32 4294967295, %s520_s14   ;;  %s327_s16 = sadd.s32 4294967294, %s520_s14   ;;  %s520_s14 = sphi %s548_s14, %s18_s14   ;;  %s516_s13 = sphi %s546_s13, %s674_s13   ;;  %s512_s12 = sphi %s544_s12, %s673_s12   ;;  %s508_s11 = sphi %s542_s11, %s672_s11   ;;  %s504_s10 = sphi %s540_s10, %s671_s10   ;;  %s500_s9 = sphi %s538_s9, %s670_s9  }
   0x7   : > { %s30_s17 = sadd.s32 1, %s516_s13  ;;  %s39_s18 = sadd.s32 1, %s508_s11 }
   0x8   : > { %p32_p0 = scmp.ge.s32.totalorder %s30_s17, 2  ;;  %p46_p1 = scmp.ne.s32.totalorder %s508_s11, %s504_s10 }
   0x9   : > { %p47_p2 = scmp.eq.s32.totalorder %s520_s14, 0  ;;  %p52_p3 = scmp.ne.s32.totalorder %s504_s10, %s500_s9 }
   0xa   : > { %s676_s17 = smov (%p32_p0, %s30_s17), 0  ;;  %p53_p5 = scmp.eq.s32.totalorder %s326_s15, 0 }
   0xb   : > { %p579_p4 = por %p47_p2, %p46_p1  ;;  %s34_s20 = ssub.s32 %s516_s13, %s676_s17 }
   0xc   : > { %p104_p6 = scmp.eq.s32.totalorder %s326_s15, 1  ;;  %p37_p7 = scmp.eq.s32.totalorder %s34_s20, 0 }
   0xd   : > { %p585_p8 = por %p53_p5, %p52_p3  ;;  %p110_p10 = scmp.eq.s32.totalorder %s327_s16, 1 }
   0xe   : > { %p589_p9 = por %p104_p6, %p46_p1  ;;  %p329_p12 = scmp.ge.s32.totalorder %s520_s14, 2 }
   0xf   : > { %s594_s23 = scalar_select %p37_p7, %s508_s11, %s39_s18  }
  0x10   : > { %p596_p11 = por %p110_p10, %p52_p3  ;;  %p356_p13 = scmp.lt.s32.totalorder %s520_s14, 2 }
  0x11   : > { %s130_s25 = sand.u32 1, %s508_s11   ;;  %s342_s27 = sshll.u32 %s516_s13, 4 }
  0x12   : > { %s330_s26 = sshll.u32 %s130_s25, 4  ;;  %s141_s30 = scalar_lea.hbm %s663_s0, %s342_s27 }
  0x13   : > { %s134_s3 = scalar_lea.vmem [#allocation2], %s330_s26  ;;  %s143_s5 = sshll.u32 %s141_s30, 4  ;;  %s144_s5 = int_to_ptr.hbm [resolvable:$true] %s143_s5 }
  0x14   : > { %s145_s4 = sshll.u32 %s134_s3, 4  ;;  %p349_p0 = pnand %p356_p13, %p579_p4  ;;  %s146_s4 = int_to_ptr.vmem [resolvable:$true] %s145_s4 }
  0x15   : > { %p333_p1 = scmp.ge.s32.totalorder %s520_s14, 1  ;;  %p157_p2 = scmp.lt.s32.totalorder %s520_s14, 3 }
  0x16   : > { %s131_s6 = scalar_lea.sflag [#allocation3], %s130_s25 }
  0x17   : > { %351 = dma.hbm_to_vmem [thread:$0]  (!%p349_p0), %s144_s5, 256, %s146_s4, %s131_s6  }
  0x18   : > { %p158_p3 = pnand %p333_p1, %p157_p2 }
  0x19   : > { %s612_s7 = sand.u32 (!%p158_p3), 1, %s504_s10  }
  0x1a   : > { %161 = sbr.rel (%p158_p3) target bundleno = 160 (0xa0), region = 28  ;;  %s334_s8 = sshll.u32 (!%p158_p3), %s612_s7, 4 }
  0x1b   : > { %s164_s15 = scalar_lea.sflag (!%p158_p3), [#allocation3], %s612_s7  ;;  %s167_s16 = scalar_lea.vmem (!%p158_p3), [#allocation2], %s334_s8 }
  0x1f   : > { %491 = dma.done.wait (%p585_p8), %s164_s15, 256  }
  0x20   : > { %493 = vsyncadd (%p585_p8), %s164_s15, 4294967040  ;;  %p194_p4 = scmp.lt.s32.totalorder %s512_s12, 1  ;;  %v522_v0 = vmov 0   ;;  %s343_s27 = sshll.u32 %s512_s12, 4  ;;  %v199_v2 = vld [vmem:[%s167_s16] sm:$0xff]  ;;  %v200_v3 = vld [vmem:[%s167_s16 + $0x8] sm:$0xff] }
  0x21   : > { %407 = vset.pattern.permute.xlu0 %v522_v0  ;;  %s225_s21 = scalar_lea.hbm %s665_s2, %s343_s27  ;;  %s192_s30 = scalar_lea.vmem [#allocation5], %s334_s8 }
  0x22   : > { %s195_s18 = scalar_select %p194_p4, %s512_s12, 1 }
  0x23   : > { %s227_s3 = sshll.u32 %s192_s30, 4  ;;  %s229_s4 = sshll.u32 %s225_s21, 4  ;;  %s228_s3 = int_to_ptr.vmem [resolvable:$true] %s227_s3  ;;  %s230_s4 = int_to_ptr.hbm [resolvable:$true] %s229_s4 }
  0x24   : > { %s336_s19 = sshll.u32 %s195_s18, 3  ;;  %s212_s5 = scalar_lea.sflag [#allocation4], %s612_s7 }
  0x25   : > { %s197_s26 = scalar_lea.vmem %s664_s1, %s336_s19  ;;  %s452_s6 = sshra.s32 %s230_s4, 4  ;;  %s453_s6 = int_to_ptr.hbm [resolvable:$true] %s452_s6 }
  0x26   : > { %v201_v1 = vld [vmem:[%s197_s26] sm:$0xff]  ;;  %s454_s12 = scalar_lea.hbm %s453_s6, 16  ;;  %s458_s8 = scalar_lea.hbm %s665_s2, 32 }
  0x27   : > { %204 = vperm.xlu0 %407, %v201_v1   ;;  %p455_p5 = scmp.ne.s32.totalorder %s453_s6, %s454_s12  ;;  %p459_p8 = scmp.lt.s32.totalorder %s453_s6, %s665_s2 }
  0x28   : > { %p460_p10 = scmp.lt.s32.totalorder %s458_s8, %s454_s12 }
  0x29   : > { %p456_p6 = pnand %p455_p5, %p589_p9 }
  0x2a   : > { %p461_p13 = por %p460_p10, %p459_p8 }
  0x2b   : > { %p457_p7 = pneg %p456_p6 }
  0x2d   : > { %p462_p0 = pnand %p461_p13, %p457_p7 }
  0x99   : > { %v205_v4 = vpop.permute.xlu0 %204 }
  0x9a   : > { %v207_v5 = vmul.f32 %v205_v4, %v199_v2  ;;  %v208_v6 = vmul.f32 %v205_v4, %v200_v3 }
  0x9c   : > { %209 = vst [vmem:[%s192_s30] sm:$0xff] %v207_v5 }
  0x9d   : > { %210 = vst [vmem:[%s192_s30 + $0x8] sm:$0xff] %v208_v6 }
  0x9e   : > { %465 = shalt.err (!%p462_p0)
}
  0x9f   : > { %346 = dma.vmem_to_hbm [thread:$0]  (%p589_p9), %s228_s3, 256, %s230_s4, %s212_s5  }
  0xa0 PF: > { %s241_s7 = sand.u32 1, %s500_s9   ;;  %p353_p1 = pnand %p329_p12, %p596_p11 }
  0xa1   : > { %s242_s20 = scalar_lea.sflag [#allocation4], %s241_s7 }
  0xa2   : > { %p354_p2 = pneg %p353_p1 }
  0xa4   : > { %495 = dma.done.wait (%p354_p2), %s242_s20, 256  }
  0xa5   : > { %497 = vsyncadd (%p354_p2), %s242_s20, 4294967040  ;;  %s18_s14 = sadd.s32 1, %s520_s14   ;;  %s670_s9 = smov %s504_s10 }
  0xa6   : > { %p15_p3 = scmp.ge.s32.totalorder %s18_s14, 4   ;;  %s671_s10 = smov %s508_s11 }
  0xa7   : > { %s672_s11 = smov %s594_s23  ;;  %s673_s12 = smov %s516_s13 }
  0xa8   : > { %s674_s13 = smov %s676_s17  ;;  %17 = sbr.rel (!%p15_p3) target bundleno = 6 (0x6), region = 76 }
  0xad   :  { %248 = vsyncpa [#allocation3], 1 }
  0xae   :  { %250 = vsyncpa [#allocation3 + $0x1], 1 }
  0xaf   :  { %251 = vsyncpa [#allocation4], 1 }
  0xb0   :  { %253 = vsyncpa [#allocation4 + $0x1], 1 }

</bundles_post_ra>
